<compile_context>
chip_gen: v7x
topology: tpu7x:2x2x1
jax: 0.10.0
libtpu: 0.0.40
codegen_flags: <defaults>
</compile_context>

<pallas_src>
import jax
import jax.numpy as jnp
from jax.experimental import pallas as pl
from jax.experimental.pallas import tpu as pltpu


def _round_up(x, m):
    return ((x + m - 1) // m) * m


def _conv2_kernel(xm_ref, xh_ref, w_ref, b_ref, o_ref, xs_ref):
    """One (image, row-tile) grid step: 3 height-tap matmuls + BN bias + SiLU.

    xm_ref : (1, th, W, 3*C1) bf16  padded rows r .. r+th-1 (width taps on lanes)
    xh_ref : (1, 2,  W, 3*C1) bf16  padded rows r+th, r+th+1 (bottom halo)
    w_ref  : (3, 3*C1, C2p)   bf16  per-dy weight slabs (BN scale + 1x1 folded)
    b_ref  : (1, C2p)         f32   folded BatchNorm bias
    o_ref  : (1, th, W, C2p)  f32
    xs_ref : (th+2, W, 3*C1)  bf16  VMEM scratch (rows 1 .. th+1 of the window)
    """
    _, th, wdim, k3 = xm_ref.shape
    c2p = o_ref.shape[3]

    x_main = xm_ref[0]                                   # (th, Wp, K3) bf16

    # Rows 1..th+1 of the (th+2)-row window live in scratch; row 0 is consumed
    # directly from the pipelined input buffer (dy=0 tap), so it is not copied.
    xs_ref[1:th, :, :] = x_main[1:th, :, :]
    xs_ref[th:th + 2, :, :] = xh_ref[0]

    # dy = 0 tap: LHS straight from the input buffer; also initialises acc.
    acc = jnp.dot(x_main.reshape(th * wdim, k3), w_ref[0],
                  preferred_element_type=jnp.float32)
    # dy = 1, 2 taps: LHS from the assembled window in scratch (static slices).
    for dy in (1, 2):
        lhs = xs_ref[dy:dy + th, :, :].reshape(th * wdim, k3)
        acc = acc + jnp.dot(lhs, w_ref[dy], preferred_element_type=jnp.float32)

    y = acc + b_ref[...]                  # folded BatchNorm bias (f32, VPU)
    y = y * jax.nn.sigmoid(y)             # SiLU (f32; sigmoid on EUP)
    o_ref[...] = y.reshape(1, th, wdim, c2p).astype(o_ref.dtype)


def conv2_forward(x_nchw, w3_hwio, w1_io, gamma, beta, mean, var,
                  eps=1e-5, tm=1024):
    """Conv2.forward: act(bn(conv3x3(x) + conv1x1(x))). NCHW in / NCHW out."""
    N, C1, H, W = x_nchw.shape
    KH, KW, _, C2 = w3_hwio.shape
    assert (KH, KW) == (3, 3)

    # ---- fold: 1x1 conv into the 3x3 centre tap; BN scale into the weights ----
    inv_std = 1.0 / jnp.sqrt(var.astype(jnp.float32) + eps)
    scale = gamma.astype(jnp.float32) * inv_std                        # (C2,)
    bias = beta.astype(jnp.float32) - mean.astype(jnp.float32) * scale
    w = w3_hwio.astype(jnp.float32).at[1, 1].add(w1_io.astype(jnp.float32))
    w = w * scale[None, None, None, :]                                 # BN scale fold

    C2p = _round_up(C2, 128)                       # lane-dense output channels
    K3 = 3 * C1
    w_stk = w.reshape(3, K3, C2)                   # rows ordered [dx=0|dx=1|dx=2]
    w_stk = jnp.pad(w_stk, ((0, 0), (0, 0), (0, C2p - C2))).astype(jnp.bfloat16)
    bias_p = jnp.pad(bias, (0, C2p - C2)).reshape(1, C2p)              # f32

    # ---- tile geometry ----
    Wp = _round_up(W, 8)                           # sublane-friendly width
    th = min(_round_up(max(tm // Wp, 2), 2), _round_up(H, 2))  # even rows/tile
    Hp = _round_up(H, th)
    n_rt = Hp // th

    # ---- layout + width-only im2col (3x, vs 9x full im2col), in bf16 ----
    x_nhwc = jnp.transpose(x_nchw, (0, 2, 3, 1)).astype(jnp.bfloat16)
    xp = jnp.pad(x_nhwc, ((0, 0), (1, Hp - H + 1), (1, Wp - W + 1), (0, 0)))
    # xp: (N, Hp+2, Wp+2, C1);  concat the three width taps on the channel axis:
    xw = jnp.concatenate([xp[:, :, dx:dx + Wp, :] for dx in range(3)], axis=-1)
    # xw: (N, Hp+2, Wp, 3*C1) bf16

    grid = (N, n_rt)
    out = pl.pallas_call(
        _conv2_kernel,
        out_shape=jax.ShapeDtypeStruct((N, Hp, Wp, C2p), jnp.float32),
        grid_spec=pltpu.PrefetchScalarGridSpec(
            num_scalar_prefetch=0,
            grid=grid,
            in_specs=[
                # main row-tile: padded rows i*th .. i*th+th-1
                pl.BlockSpec((1, th, Wp, K3), lambda n, i: (n, i, 0, 0)),
                # bottom halo: padded rows (i+1)*th .. (i+1)*th+1  (th is even)
                pl.BlockSpec((1, 2, Wp, K3),
                             lambda n, i: (n, (i + 1) * (th // 2), 0, 0)),
                # resident weights / bias (constant index map -> no re-DMA)
                pl.BlockSpec((3, K3, C2p), lambda n, i: (0, 0, 0)),
                pl.BlockSpec((1, C2p), lambda n, i: (0, 0)),
            ],
            out_specs=pl.BlockSpec((1, th, Wp, C2p), lambda n, i: (n, i, 0, 0)),
            scratch_shapes=[pltpu.VMEM((th + 2, Wp, K3), jnp.bfloat16)],
        ),
        compiler_params=pltpu.CompilerParams(
            dimension_semantics=("parallel", "parallel"),
            vmem_limit_bytes=64 * 1024 * 1024),
    )(xw, xw, w_stk, bias_p)

    out = out[:, :H, :W, :C2]
    return jnp.transpose(out, (0, 3, 1, 2))        # back to NCHW (f32)


def _reference(x, w3_hwio, w1_io, gamma, beta, mean, var, eps=1e-5):
    """Pure-JAX (f32) reference for correctness check."""
    w3_oihw = jnp.transpose(w3_hwio, (3, 2, 0, 1))
    y3 = jax.lax.conv_general_dilated(
        x, w3_oihw, (1, 1), ((1, 1), (1, 1)),
        dimension_numbers=("NCHW", "OIHW", "NCHW"))
    w1_oihw = jnp.transpose(w1_io, (1, 0))[:, :, None, None]
    y1 = jax.lax.conv_general_dilated(
        x, w1_oihw, (1, 1), ((0, 0), (0, 0)),
        dimension_numbers=("NCHW", "OIHW", "NCHW"))
    y = y3 + y1
    s = gamma / jnp.sqrt(var + eps)
    y = y * s[None, :, None, None] + (beta - mean * s)[None, :, None, None]
    return y * jax.nn.sigmoid(y)


if __name__ == "__main__":
    key = jax.random.PRNGKey(0)
    k_x, k_w3, k_w1, k_g, k_b, k_m, k_v = jax.random.split(key, 7)

    N, C1, C2, H, W = 2, 4, 8, 16, 16
    x = jax.random.normal(k_x, (N, C1, H, W), jnp.float32)

    # Deterministic synthetic parameters (module shapes: conv (C2,C1,3,3),
    # cv2 (C2,C1,1,1), bn affine + running stats of size C2).
    w3_hwio = 0.1 * jax.random.normal(k_w3, (3, 3, C1, C2), jnp.float32)
    w1_io = 0.1 * jax.random.normal(k_w1, (C1, C2), jnp.float32)
    gamma = 1.0 + 0.1 * jax.random.normal(k_g, (C2,), jnp.float32)
    beta = 0.1 * jax.random.normal(k_b, (C2,), jnp.float32)
    mean = 0.1 * jax.random.normal(k_m, (C2,), jnp.float32)
    var = 0.5 + jax.random.uniform(k_v, (C2,), jnp.float32)

    fwd = jax.jit(lambda a, b, c, d, e, f, g: conv2_forward(a, b, c, d, e, f, g))
    out = fwd(x, w3_hwio, w1_io, gamma, beta, mean, var)
    out = jax.block_until_ready(out)

    ref = _reference(x, w3_hwio, w1_io, gamma, beta, mean, var)
    assert out.shape == (N, C2, H, W)
    # bf16 MXU operands -> loosened tolerance vs the all-f32 path.
    assert jnp.allclose(out, ref, atol=3e-2, rtol=3e-2), "mismatch vs reference"

    print("KERNEL_OK")
</pallas_src>

<mosaic_0001>
module attributes {stable_mosaic.version = 11 : i64} {
  func.func @_conv2_kernel(%arg0: i32, %arg1: i32, %arg2: memref<1x16x16x12xbf16, #tpu.memory_space<vmem>>, %arg3: memref<1x2x16x12xbf16, #tpu.memory_space<vmem>>, %arg4: memref<3x12x128xbf16, #tpu.memory_space<vmem>>, %arg5: memref<1x128xf32, #tpu.memory_space<vmem>>, %arg6: memref<1x16x16x128xf32, #tpu.memory_space<vmem>>, %arg7: memref<18x16x12xbf16, #tpu.memory_space<vmem>>) attributes {dimension_semantics = [#tpu.dimension_semantics<parallel>, #tpu.dimension_semantics<parallel>], iteration_bounds = array<i64: 2, 1>, scalar_prefetch = 0 : i64, scratch_operands = 1 : i64, tpu.core_type = #tpu.core_type<tc>, window_params = [{transform_indices = @transform_0, window_bounds = array<i64: 1, 16, 16, 12>}, {transform_indices = @transform_1, window_bounds = array<i64: 1, 2, 16, 12>}, {pipeline_mode = #tpu.pipeline_mode<synchronous>, transform_indices = @transform_2, window_bounds = array<i64: 3, 12, 128>}, {pipeline_mode = #tpu.pipeline_mode<synchronous>, transform_indices = @transform_3, window_bounds = array<i64: 1, 128>}, {transform_indices = @transform_4, window_bounds = array<i64: 1, 16, 16, 128>}]} {
    %c0 = arith.constant 0 : index
    %c0_0 = arith.constant 0 : index
    %c0_1 = arith.constant 0 : index
    %c0_2 = arith.constant 0 : index
    %0 = vector.load %arg2[%c0, %c0_0, %c0_1, %c0_2] : memref<1x16x16x12xbf16, #tpu.memory_space<vmem>>, vector<1x16x16x12xbf16>
    %1 = vector.shape_cast %0 : vector<1x16x16x12xbf16> to vector<16x16x12xbf16>
    %2 = vector.extract_strided_slice %1 {offsets = [1, 0, 0], sizes = [15, 16, 12], strides = [1, 1, 1]} : vector<16x16x12xbf16> to vector<15x16x12xbf16>
    %c1 = arith.constant 1 : index
    %c0_3 = arith.constant 0 : index
    %c0_4 = arith.constant 0 : index
    %3 = vector.load %arg7[%c1, %c0_3, %c0_4] : memref<18x16x12xbf16, #tpu.memory_space<vmem>>, vector<15x16x12xbf16>
    tpu.vector_store %arg7[%c1, %c0_3, %c0_4], %2 {strides = array<i32>} : memref<18x16x12xbf16, #tpu.memory_space<vmem>>, vector<15x16x12xbf16>,
    %c0_5 = arith.constant 0 : index
    %c0_6 = arith.constant 0 : index
    %c0_7 = arith.constant 0 : index
    %c0_8 = arith.constant 0 : index
    %4 = vector.load %arg3[%c0_5, %c0_6, %c0_7, %c0_8] : memref<1x2x16x12xbf16, #tpu.memory_space<vmem>>, vector<1x2x16x12xbf16>
    %5 = vector.shape_cast %4 : vector<1x2x16x12xbf16> to vector<2x16x12xbf16>
    %c16 = arith.constant 16 : index
    %c0_9 = arith.constant 0 : index
    %c0_10 = arith.constant 0 : index
    %6 = vector.load %arg7[%c16, %c0_9, %c0_10] : memref<18x16x12xbf16, #tpu.memory_space<vmem>>, vector<2x16x12xbf16>
    tpu.vector_store %arg7[%c16, %c0_9, %c0_10], %5 {strides = array<i32>} : memref<18x16x12xbf16, #tpu.memory_space<vmem>>, vector<2x16x12xbf16>,
    %7 = vector.shape_cast %1 : vector<16x16x12xbf16> to vector<256x12xbf16>
    %c0_11 = arith.constant 0 : index
    %c0_12 = arith.constant 0 : index
    %c0_13 = arith.constant 0 : index
    %8 = vector.load %arg4[%c0_11, %c0_12, %c0_13] : memref<3x12x128xbf16, #tpu.memory_space<vmem>>, vector<1x12x128xbf16>
    %9 = vector.shape_cast %8 : vector<1x12x128xbf16> to vector<12x128xbf16>
    %cst = arith.constant dense<0.000000e+00> : vector<256x128xf32>
    %10 = tpu.matmul %7, %9, %cst {dimension_numbers = #tpu.dot_dimension_numbers<[1], [0], [0], [1], [0, 0, 1, 1], [], []>} : vector<256x12xbf16>, vector<12x128xbf16>, vector<256x128xf32> -> vector<256x128xf32>
    %c1_14 = arith.constant 1 : index
    %c0_15 = arith.constant 0 : index
    %c0_16 = arith.constant 0 : index
    %11 = vector.load %arg7[%c1_14, %c0_15, %c0_16] : memref<18x16x12xbf16, #tpu.memory_space<vmem>>, vector<16x16x12xbf16>
    %12 = vector.shape_cast %11 : vector<16x16x12xbf16> to vector<256x12xbf16>
    %c1_17 = arith.constant 1 : index
    %c0_18 = arith.constant 0 : index
    %c0_19 = arith.constant 0 : index
    %13 = vector.load %arg4[%c1_17, %c0_18, %c0_19] : memref<3x12x128xbf16, #tpu.memory_space<vmem>>, vector<1x12x128xbf16>
    %14 = vector.shape_cast %13 : vector<1x12x128xbf16> to vector<12x128xbf16>
    %cst_20 = arith.constant dense<0.000000e+00> : vector<256x128xf32>
    %15 = tpu.matmul %12, %14, %cst_20 {dimension_numbers = #tpu.dot_dimension_numbers<[1], [0], [0], [1], [0, 0, 1, 1], [], []>} : vector<256x12xbf16>, vector<12x128xbf16>, vector<256x128xf32> -> vector<256x128xf32>
    %16 = arith.addf %10, %15 : vector<256x128xf32>
    %c2 = arith.constant 2 : index
    %c0_21 = arith.constant 0 : index
    %c0_22 = arith.constant 0 : index
    %17 = vector.load %arg7[%c2, %c0_21, %c0_22] : memref<18x16x12xbf16, #tpu.memory_space<vmem>>, vector<16x16x12xbf16>
    %18 = vector.shape_cast %17 : vector<16x16x12xbf16> to vector<256x12xbf16>
    %c2_23 = arith.constant 2 : index
    %c0_24 = arith.constant 0 : index
    %c0_25 = arith.constant 0 : index
    %19 = vector.load %arg4[%c2_23, %c0_24, %c0_25] : memref<3x12x128xbf16, #tpu.memory_space<vmem>>, vector<1x12x128xbf16>
    %20 = vector.shape_cast %19 : vector<1x12x128xbf16> to vector<12x128xbf16>
    %cst_26 = arith.constant dense<0.000000e+00> : vector<256x128xf32>
    %21 = tpu.matmul %18, %20, %cst_26 {dimension_numbers = #tpu.dot_dimension_numbers<[1], [0], [0], [1], [0, 0, 1, 1], [], []>} : vector<256x12xbf16>, vector<12x128xbf16>, vector<256x128xf32> -> vector<256x128xf32>
    %22 = arith.addf %16, %21 : vector<256x128xf32>
    %c0_27 = arith.constant 0 : index
    %c0_28 = arith.constant 0 : index
    %23 = vector.load %arg5[%c0_27, %c0_28] : memref<1x128xf32, #tpu.memory_space<vmem>>, vector<1x128xf32>
    %24 = vector.broadcast %23 : vector<1x128xf32> to vector<256x128xf32>
    %25 = arith.addf %22, %24 : vector<256x128xf32>
    %26 = arith.negf %25 : vector<256x128xf32>
    %27 = math.exp %26 : vector<256x128xf32>
    %cst_29 = arith.constant 1.000000e+00 : f32
    %28 = vector.broadcast %cst_29 : f32 to vector<256x128xf32>
    %29 = arith.addf %28, %27 : vector<256x128xf32>
    %30 = arith.divf %28, %29 : vector<256x128xf32>
    %31 = arith.mulf %25, %30 : vector<256x128xf32>
    %32 = vector.shape_cast %31 : vector<256x128xf32> to vector<1x16x16x128xf32>
    %c0_30 = arith.constant 0 : index
    %c0_31 = arith.constant 0 : index
    %c0_32 = arith.constant 0 : index
    %c0_33 = arith.constant 0 : index
    %33 = vector.load %arg6[%c0_30, %c0_31, %c0_32, %c0_33] : memref<1x16x16x128xf32, #tpu.memory_space<vmem>>, vector<1x16x16x128xf32>
    tpu.vector_store %arg6[%c0_30, %c0_31, %c0_32, %c0_33], %32 {strides = array<i32>} : memref<1x16x16x128xf32, #tpu.memory_space<vmem>>, vector<1x16x16x128xf32>,
    return
  }
  func.func @transform_0(%arg0: i32, %arg1: i32) -> (i32, i32, i32, i32) {
    %c0_i32 = arith.constant 0 : i32
    %c0_i32_0 = arith.constant 0 : i32
    %c0_i32_1 = arith.constant 0 : i32
    return %arg0, %arg1, %c0_i32, %c0_i32_0 : i32, i32, i32, i32
  }
  func.func @transform_1(%arg0: i32, %arg1: i32) -> (i32, i32, i32, i32) {
    %c1_i32 = arith.constant 1 : i32
    %0 = arith.addi %arg1, %c1_i32 : i32
    %c8_i32 = arith.constant 8 : i32
    %1 = arith.muli %0, %c8_i32 : i32
    %c0_i32 = arith.constant 0 : i32
    %c0_i32_0 = arith.constant 0 : i32
    %c0_i32_1 = arith.constant 0 : i32
    return %arg0, %1, %c0_i32, %c0_i32_0 : i32, i32, i32, i32
  }
  func.func @transform_2(%arg0: i32, %arg1: i32) -> (i32, i32, i32) {
    %c0_i32 = arith.constant 0 : i32
    %c0_i32_0 = arith.constant 0 : i32
    %c0_i32_1 = arith.constant 0 : i32
    %c0_i32_2 = arith.constant 0 : i32
    return %c0_i32, %c0_i32_0, %c0_i32_1 : i32, i32, i32
  }
  func.func @transform_3(%arg0: i32, %arg1: i32) -> (i32, i32) {
    %c0_i32 = arith.constant 0 : i32
    %c0_i32_0 = arith.constant 0 : i32
    %c0_i32_1 = arith.constant 0 : i32
    return %c0_i32, %c0_i32_0 : i32, i32
  }
  func.func @transform_4(%arg0: i32, %arg1: i32) -> (i32, i32, i32, i32) {
    %c0_i32 = arith.constant 0 : i32
    %c0_i32_0 = arith.constant 0 : i32
    %c0_i32_1 = arith.constant 0 : i32
    return %arg0, %arg1, %c0_i32, %c0_i32_0 : i32, i32, i32, i32
  }
}

</mosaic_0001>

<bundles_post_ra>
// kernel: _lambda_.1
= control target key start
LH: loop header
LB: loop body
LE: loop exit
PB: predicated region body
PF: predicated region fallthrough
CT: control target
= control target key end

     0   :  { %s3138_s0 = inlined_call_operand.hbm [shape: bf16[2,18,16,12], index: 0, kind: input, shape index: {}, may-alias: {0,1}]   ;;  %s3139_s1 = inlined_call_operand.hbm [shape: bf16[2,18,16,12], index: 1, kind: input, shape index: {}, may-alias: {0,1}]   ;;  %s3140_s2 = inlined_call_operand.hbm [shape: bf16[3,12,128], index: 2, kind: input, shape index: {}]   ;;  %s3141_s3 = inlined_call_operand.hbm [shape: f32[1,128], index: 3, kind: input, shape index: {}]   ;;  %s3142_s4 = inlined_call_operand.hbm [shape: f32[2,16,16,128], index: 4, kind: output, shape index: {}]  }
   0x1   :  { %3150 = sst [smem:[#allocation19_spill]] %s3138_s0 }
   0x2   :  { %3151 = sst [smem:[#allocation20_spill]] %s3140_s2 }
   0x3   :  { %3152 = sst [smem:[#allocation21_spill]] %s3141_s3 }
   0x4   :  { %9 = vsyncpa [#allocation4], 0 }
   0x5   :  { %11 = vsyncpa [#allocation4 + $0x1], 0 }
   0x6   :  { %12 = vsyncpa [#allocation7], 0 }
   0x7   :  { %14 = vsyncpa [#allocation7 + $0x1], 0 }
   0x8   :  { %15 = vsyncpa [#allocation10], 0 }
   0x9   :  { %16 = vsyncpa [#allocation5], 0 }
   0xa   :  { %18 = vsyncpa [#allocation5 + $0x1], 0  ;;  %s2501_s15 = smov 0   ;;  %s2503_s16 = smov 0  }
   0xb   :  { %s2505_s17 = smov 0   ;;  %s2507_s18 = smov 0  }
   0xc   :  { %s2509_s19 = smov 0   ;;  %s2511_s20 = smov 0  }
   0xd LB: > { %s2532_s21 = sadd.s32 4294967295, %s2465_s20   ;;  %s1666_s22 = sadd.s32 4294967294, %s2465_s20   ;;  %s2465_s20 = sphi %s2511_s20, %s24_s20   ;;  %s2461_s19 = sphi %s2509_s19, %s3182_s19   ;;  %s2457_s18 = sphi %s2507_s18, %s3181_s18   ;;  %s2453_s17 = sphi %s2505_s17, %s3180_s17   ;;  %s2449_s16 = sphi %s2503_s16, %s3179_s16   ;;  %s2445_s15 = sphi %s2501_s15, %s3178_s15  }
   0xe   : > { %p58_p0 = scmp.ne.s32.totalorder %s2449_s16, %s2445_s15  ;;  %p3143_p1 = scmp.eq.s32.totalorder %s2532_s21, 0 }
   0xf   : > { %p164_p3 = scmp.eq.s32.totalorder %s1666_s22, 1  ;;  %p1667_p5 = scmp.ge.s32.totalorder %s2465_s20, 1 }
  0x10   : > { %p2541_p4 = por %p3143_p1, %p58_p0  ;;  %p171_p7 = scmp.lt.s32.totalorder %s2465_s20, 3 }
  0x11   : > { %p2546_p6 = por %p164_p3, %p58_p0  ;;  %s2467_s26 = smov [#allocation8]  }
  0x12   : > { %s3153_s23 = scalar_select %p2541_p4, 1, 0 }
  0x13   : > { %s3154_s24 = scalar_select %p2546_p6, 1, 0 }
  0x14   : > { %p2551_p8 = pnand %p1667_p5, %p171_p7  ;;  %s183_s27 = sshll.u32 %s2467_s26, 4  ;;  %s2555_s27 = int_to_ptr.vmem [resolvable:$true] %s183_s27 }
  0x15   : > { %s2468_s29 = smov [#allocation9]   ;;  %s3157_s2 = sld [smem:[#allocation20_spill]] }
  0x16   : > { %p2027_p9 = pneg %p2551_p8  ;;  %s197_s30 = sshll.u32 %s2468_s29, 4  ;;  %s2566_s30 = int_to_ptr.vmem [resolvable:$true] %s197_s30 }
  0x18   : > { %p2562_p11 = pnand %p2027_p9, %p3143_p1 }
  0x1a   : > { %p2256_p13 = pneg %p2562_p11 }
  0x1b   : > { %s2254_s7 = scalar_lea.hbm %s3157_s2, 384 }
  0x1c   : > { %p2255_p12 = scmp.ne.s32.totalorder %s3157_s2, %s2254_s7  ;;  %p2261_p5 = scmp.lt.u32.totalorder %s2254_s7, %s3157_s2 }
  0x1e   : > { %p2257_p0 = pnand %p2256_p13, %p2255_p12 }
  0x20   : > { %p2258_p3 = pneg %p2257_p0 }
  0x22   : > { %p2263_p7 = pnand %p2261_p5, %p2258_p3 }
  0x24   : > { %2266 = shalt.err (!%p2263_p7)
}
  0x25   : > { %s2267_s12 = scalar_lea.vmem %s2555_s27, 384  ;;  %p2275_p2 = scmp.lt.s32.totalorder %s2555_s27, %s2555_s27 }
  0x26   : > { %p2268_p9 = scmp.ne.s32.totalorder %s2555_s27, %s2267_s12  ;;  %p2276_p12 = scmp.lt.s32.totalorder %s2267_s12, %s2267_s12 }
  0x28   : > { %p2270_p10 = pnand %p2268_p9, %p2256_p13  ;;  %p2277_p0 = por %p2276_p12, %p2275_p2 }
  0x2a   : > { %p2271_p1 = pneg %p2270_p10 }
  0x2c   : > { %p2278_p6 = pnand %p2277_p0, %p2271_p1 }
  0x2e   : > { %2281 = shalt.err (!%p2278_p6)
}
  0x2f   : > { %s3145_s13 = smov 64   ;;  %s2470_s14 = smov 4  }
  0x30   : > { %2030 = dma.hbm_to_vmem [thread:$0]  (!%p2562_p11), %s3157_s2, 384, %s2555_s27, [#allocation7], %s3145_s13, %s3145_s13, %s2470_s14  }
  0x31   : > { %s3158_s3 = sld [smem:[#allocation21_spill]] }
  0x37   : > { %s2282_s6 = scalar_lea.hbm %s3158_s3, 16 }
  0x38   : > { %p2283_p1 = scmp.ne.s32.totalorder %s3158_s3, %s2282_s6  ;;  %p2289_p10 = scmp.lt.u32.totalorder %s2282_s6, %s3158_s3 }
  0x3a   : > { %p2285_p2 = pnand %p2283_p1, %p2256_p13 }
  0x3c   : > { %p2286_p6 = pneg %p2285_p2 }
  0x3e   : > { %p2291_p3 = pnand %p2289_p10, %p2286_p6 }
  0x40   : > { %2294 = shalt.err (!%p2291_p3)
}
  0x41   : > { %s2295_s27 = scalar_lea.vmem %s2566_s30, 16  ;;  %s2302_s11 = scalar_lea.vmem %s2566_s30, 32 }
  0x42   : > { %p2296_p5 = scmp.ne.s32.totalorder %s2566_s30, %s2295_s27  ;;  %p2303_p12 = scmp.lt.s32.totalorder %s2566_s30, %s2566_s30 }
  0x43   : > { %p2304_p0 = scmp.lt.s32.totalorder %s2302_s11, %s2295_s27 }
  0x44   : > { %p2298_p7 = pnand %p2296_p5, %p2256_p13 }
  0x45   : > { %p2305_p1 = por %p2304_p0, %p2303_p12 }
  0x46   : > { %p2299_p9 = pneg %p2298_p7 }
  0x48   : > { %p2306_p2 = pnand %p2305_p1, %p2299_p9 }
  0x4a   : > { %2309 = shalt.err (!%p2306_p2)
}
  0x4b   : > { %2033 = dma.hbm_to_vmem [thread:$0]  (!%p2562_p11), %s3158_s3, 16, %s2566_s30, [#allocation10]  }
  0x4c   : > { %s36_s26 = sadd.s32 1, %s2461_s19  ;;  %s45_s29 = sadd.s32 1, %s2453_s17 }
  0x4d   : > { %p38_p13 = scmp.ge.s32.totalorder %s36_s26, 2  ;;  %p52_p6 = scmp.ne.s32.totalorder %s2453_s17, %s2449_s16 }
  0x4e   : > { %p53_p10 = scmp.eq.s32.totalorder %s2465_s20, 0  ;;  %p2047_p3 = scmp.lt.s32.totalorder %s2465_s20, 2 }
  0x4f   : > { %s3184_s26 = smov (%p38_p13, %s36_s26), 0  ;;  %p3160_p7 = scmp.eq.s32.totalorder %s2532_s21, 1 }
  0x50   : > { %3159 = sst [smem:[#allocation17_spill]] %s3184_s26  ;;  %p54_p5 = por %p53_p10, %p52_p6 }
  0x51   : > { %p2634_p9 = por %p3160_p7, %p52_p6  ;;  %s40_s5 = ssub.s32 %s2461_s19, %s3184_s26 }
  0x52   : > { %s2641_s30 = sand.u32 1, %s2453_s17   ;;  %p43_p11 = scmp.eq.s32.totalorder %s40_s5, 0 }
  0x53   : > { %s3161_s28 = scalar_select %p2634_p9, 1, 0 }
  0x54   : > { %s1671_s6 = sshll.u32 %s2641_s30, 7  ;;  %s3144_s7 = smul.u32 2304, %s2461_s19 }
  0x55   : > { %s2646_s8 = scalar_select %p43_p11, %s2453_s17, %s45_s29  }
  0x56   : > { %s3163_s0 = sld [smem:[#allocation19_spill]]  ;;  %s212_s11 = scalar_lea.vmem [#allocation3], %s1671_s6 }
  0x57   : > { %3162 = sst [smem:[#allocation18_spill]] %s2646_s8  ;;  %s230_s12 = sshll.u32 %s212_s11, 4  ;;  %s2661_s12 = int_to_ptr.vmem [resolvable:$true] %s230_s12 }
  0x58   : > { %p2657_p12 = pnand %p2047_p3, %p54_p5  ;;  %s209_s5 = scalar_lea.sflag [#allocation4], %s2641_s30 }
  0x5a   : > { %p2312_p1 = pneg %p2657_p12 }
  0x5c   : > { %s2653_s27 = scalar_lea.hbm %s3163_s0, %s3144_s7  ;;  %s2315_s11 = scalar_lea.hbm %s3163_s0, 4608 }
  0x5d   : > { %s2310_s9 = scalar_lea.hbm %s2653_s27, 2048  ;;  %p2316_p6 = scmp.lt.u32.totalorder %s2653_s27, %s3163_s0 }
  0x5e   : > { %p2311_p0 = scmp.ne.s32.totalorder %s2653_s27, %s2310_s9  ;;  %p2317_p10 = scmp.lt.u32.totalorder %s2315_s11, %s2310_s9 }
  0x5f   : > { %p2319_p5 = scmp.lt.u32.totalorder %s2310_s9, %s2653_s27 }
  0x60   : > { %p2313_p2 = pnand %p2312_p1, %p2311_p0  ;;  %p2318_p3 = por %p2317_p10, %p2316_p6 }
  0x62   : > { %p2314_p13 = pneg %p2313_p2  ;;  %p2320_p7 = por %p2319_p5, %p2318_p3 }
  0x64   : > { %p2321_p11 = pnand %p2320_p7, %p2314_p13 }
  0x66   : > { %2324 = shalt.err (!%p2321_p11)
}
  0x67   : > { %s2325_s29 = scalar_lea.vmem %s2661_s12, 2048  ;;  %s2471_s6 = smov [#allocation3]  }
  0x68   : > { %p2326_p0 = scmp.ne.s32.totalorder %s2661_s12, %s2325_s29  ;;  %s2330_s10 = sshll.u32 %s2471_s6, 4  ;;  %s2331_s10 = int_to_ptr.vmem [resolvable:$false] %s2330_s10 }
  0x69   : > { %s2332_s13 = scalar_lea.vmem %s2331_s10, 4096  ;;  %p2333_p4 = scmp.lt.s32.totalorder %s2661_s12, %s2331_s10 }
  0x6a   : > { %p2328_p2 = pnand %p2326_p0, %p2312_p1  ;;  %p2334_p6 = scmp.lt.s32.totalorder %s2332_s13, %s2325_s29 }
  0x6c   : > { %p2329_p9 = pneg %p2328_p2  ;;  %p2335_p10 = por %p2334_p6, %p2333_p4 }
  0x6e   : > { %p2336_p3 = pnand %p2335_p10, %p2329_p9 }
  0x70   : > { %2339 = shalt.err (!%p2336_p3)
}
  0x71   : > { %s3165_s7 = smov 64   ;;  %s1673_s9 = sshll.u32 %s2641_s30, 4 }
  0x72   : > { %2037 = dma.hbm_to_vmem [thread:$0]  (!%p2657_p12), %s2653_s27, 2048, %s2661_s12, %s209_s5, %s3165_s7, %s3165_s7, %s2470_s14  }
  0x73   : > { %s3166_s11 = smul.u32 2304, %s2461_s19  ;;  %s244_s0 = scalar_lea.vmem [#allocation6], %s1673_s9 }
  0x74   : > { %s256_s2 = sshll.u32 %s244_s0, 4  ;;  %s3167_s3 = sand.u32 1, %s2465_s20   ;;  %s2703_s2 = int_to_ptr.vmem [resolvable:$true] %s256_s2 }
  0x75   : > { %s1578_s10 = scalar_lea.hbm %s3139_s1, %s3166_s11  ;;  %s2707_s26 = scalar_lea.sflag [#allocation7], %s3167_s3 }
  0x76   : > { %s2701_s13 = scalar_lea.hbm %s1578_s10, 2048  ;;  %s2370_s8 = scalar_lea.hbm %s1578_s10, 2304 }
  0x77   : > { %p2341_p4 = scmp.ne.s32.totalorder %s2701_s13, %s2370_s8  ;;  %s2345_s12 = scalar_lea.hbm %s3139_s1, 4608 }
  0x78   : > { %p2346_p5 = scmp.lt.u32.totalorder %s2701_s13, %s3139_s1  ;;  %p2347_p7 = scmp.lt.u32.totalorder %s2345_s12, %s2370_s8 }
  0x79   : > { %p2343_p9 = pnand %p2341_p4, %p2312_p1  ;;  %p2349_p0 = scmp.lt.u32.totalorder %s2370_s8, %s2701_s13 }
  0x7a   : > { %p2348_p11 = por %p2347_p7, %p2346_p5 }
  0x7b   : > { %p2344_p13 = pneg %p2343_p9 }
  0x7c   : > { %p2350_p2 = por %p2349_p0, %p2348_p11 }
  0x7e   : > { %p2351_p6 = pnand %p2350_p2, %p2344_p13 }
  0x80   : > { %2354 = shalt.err (!%p2351_p6)
}
  0x81   : > { %s2355_s0 = scalar_lea.vmem %s2703_s2, 256  ;;  %s2472_s3 = smov [#allocation6]  }
  0x82   : > { %p2356_p10 = scmp.ne.s32.totalorder %s2703_s2, %s2355_s0  ;;  %s2360_s9 = sshll.u32 %s2472_s3, 4  ;;  %s2361_s9 = int_to_ptr.vmem [resolvable:$false] %s2360_s9 }
  0x83   : > { %s2362_s29 = scalar_lea.vmem %s2361_s9, 512  ;;  %p2363_p9 = scmp.lt.s32.totalorder %s2703_s2, %s2361_s9 }
  0x84   : > { %p2358_p3 = pnand %p2356_p10, %p2312_p1  ;;  %p2364_p5 = scmp.lt.s32.totalorder %s2362_s29, %s2355_s0 }
  0x86   : > { %p2359_p4 = pneg %p2358_p3  ;;  %p2365_p7 = por %p2364_p5, %p2363_p9 }
  0x88   : > { %p2366_p11 = pnand %p2365_p7, %p2359_p4 }
  0x8a   : > { %2369 = shalt.err (!%p2366_p11)
}
  0x8b   : > { %2040 = dma.hbm_to_vmem [thread:$0]  (!%p2657_p12), %s2701_s13, 256, %s2703_s2, %s2707_s26, %s3165_s7, %s3165_s7, %s2470_s14  }
  0x8c   : > { %268 = sbr.rel (%p2551_p8) target bundleno = 523 (0x20b), region = 36  ;;  %s2738_s8 = sand.u32 (!%p2551_p8), 1, %s2449_s16  }
  0x8d   : > { %s1676_s6 = sshll.u32 (!%p2551_p8), %s2738_s8, 7  ;;  %s271_s10 = scalar_lea.sflag (!%p2551_p8), [#allocation4], %s2738_s8 }
  0x8e   : > { %s2742_s30 = scalar_lea.vmem (!%p2551_p8), [#allocation3], %s1676_s6  ;;  %p3168_p1 = scmp.ne.s32.totalorder (!%p2551_p8), %s3153_s23, 0 }
  0x93   : > { %2424 = dma.done.wait (%p3168_p1), %s271_s10, 2048  }
  0x94   : > { %2426 = vsyncadd (%p3168_p1), %s271_s10, 4294965248  ;;  %s279_s2 = sand.u32 1, %s2532_s21   ;;  %s1677_s25 = sshll.u32 %s2738_s8, 4 }
  0x95   : > { %s280_s14 = scalar_lea.sflag [#allocation7], %s279_s2  ;;  %s2750_s26 = scalar_lea.vmem [#allocation6], %s1677_s25 }
  0x96   : > { %2428 = dma.done.wait (%p3168_p1), %s280_s14, 256  }
  0x97   : > { %2430 = vsyncadd (%p3168_p1), %s280_s14, 4294967040  ;;  %p3169_p8 = scmp.eq.s32.totalorder %s2532_s21, 0 }
  0x99   : > { %2432 = dma.done.wait (%p3169_p8), [#allocation7], 384   ;;  %p3170_p12 = pmov %p3169_p8 }
  0x9a   : > { %p3171_p13 = pmov %p3169_p8 }
  0x9b   : > { %2434 = vsyncadd (%p3170_p12), [#allocation7], 4294966912 }
  0x9c   : > { %2436 = dma.done.wait (%p3171_p13), [#allocation10], 16   ;;  %p3172_p0 = pmov %p3169_p8 }
  0x9d   : > { %vm564_vm0 = vcmask 1045504   ;;  %v2105_v0 = vld [vmem:[#allocation8] sm:$0x3f]   ;;  %vm455_vm1 = vcmask 97280   ;;  %v2108_v3 = vld [vmem:[%s2742_s30 + $0x8] sm:$0xff]   ;;  %v2110_v7 = vld [vmem:[%s2742_s30 + $0x10] sm:$0xff]  }
  0x9e   : > { %2438 = vsyncadd (%p3172_p0), [#allocation10], 4294967280  ;;  %v2106_v1 = vld [vmem:[%s2742_s30] sm:$0xff]   ;;  %2009 = vmatprep.subr.msk.bf16.mxu0 %vm564_vm0, %v2105_v0  ;;  %v788_v2 = vsel %vm564_vm0, %v2105_v0, 0  ;;  %v2107_v4 = vld [vmem:[#allocation8 + $0x8] sm:$0x3f]  }
  0x9f   : > { %1875 = vmatpush3.bf16.msra.mxu0 %v788_v2  ;;  %1876 = vmatprep.mubr.msk.bf16.mxu0 %vm455_vm1, %v2106_v1  ;;  %456 = vst.msk [vmem:[#allocation2 + $0x8] sm:$0xff] %vm455_vm1, %v2108_v3  ;;  %v2109_v5 = vld [vmem:[#allocation8 + $0x10] sm:$0x3f]   ;;  %v566_v6 = vsel %vm564_vm0, %v2107_v4, 0  ;;  %v2111_v9 = vld [vmem:[%s2742_s30 + $0x18] sm:$0xff]   ;;  %457 = vst.msk [vmem:[#allocation2 + $0x10] sm:$0xff] %vm455_vm1, %v2110_v7 }
  0xa0   : > { %2008 = vmatprep.subr.msk.bf16.mxu1 %vm564_vm0, %v2107_v4  ;;  %v1025_v8 = vsel %vm564_vm0, %v2109_v5, 0  ;;  %2011 = vmatprep.subr.msk.bf16.mxu0 %vm564_vm0, %v2109_v5  ;;  %v2112_v10 = vld [vmem:[%s2742_s30 + $0x20] sm:$0xff]   ;;  %458 = vst.msk [vmem:[#allocation2 + $0x18] sm:$0xff] %vm455_vm1, %v2111_v9  ;;  %v2113_v11 = vld [vmem:[%s2742_s30 + $0x28] sm:$0xff]   ;;  %v2114_v12 = vld [vmem:[%s2742_s30 + $0x30] sm:$0xff]   ;;  %s1680_s21 = sshll.u32 %s2738_s8, 8 }
  0xa1   : > { %1841 = vmatpush3.bf16.msra.mxu1 %v566_v6  ;;  %459 = vst.msk [vmem:[#allocation2 + $0x20] sm:$0xff] %vm455_vm1, %v2112_v10  ;;  %460 = vst.msk [vmem:[#allocation2 + $0x28] sm:$0xff] %vm455_vm1, %v2113_v11  ;;  %v2115_v13 = vld [vmem:[%s2742_s30 + $0x38] sm:$0xff]   ;;  %v2791_v15 = vld [vmem:[%s2742_s30 + $0x40] sm:$0xff]   ;;  %s2954_s23 = scalar_lea.vmem [#allocation11], %s1680_s21  ;;  %s1788_s22 = sshll.u32 %s2457_s18, 12 }
  0xa2   : > { %1877 = vmatmul.mubr.msk.bf16.vlgmr.msra.gmra.mrb[0].mxu0 %vm455_vm1, %v2108_v3  ;;  %2010 = vmatprep.subr.msk.bf16.mxu1 %vm564_vm0, %v2105_v0  ;;  %461 = vst.msk [vmem:[#allocation2 + $0x30] sm:$0xff] %vm455_vm1, %v2114_v12  ;;  %462 = vst.msk [vmem:[#allocation2 + $0x38] sm:$0xff] %vm455_vm1, %v2115_v13  ;;  %v2794_v16 = vld [vmem:[%s2742_s30 + $0x48] sm:$0xff]   ;;  %v2800_v18 = vld [vmem:[%s2742_s30 + $0x50] sm:$0xff]   ;;  %s1532_s7 = sshll.u32 %s2954_s23, 4  ;;  %s3083_s12 = scalar_lea.hbm %s3142_s4, %s1788_s22  ;;  %s3085_s7 = int_to_ptr.vmem [resolvable:$true] %s1532_s7 }
  0xa3   : > { %1909 = vmatpush3.bf16.msra.mxu0 %v1025_v8  ;;  %1880 = vmatprep.mubr.msk.bf16.mxu0 %vm455_vm1, %v2110_v7  ;;  %463 = vst.msk [vmem:[#allocation2 + $0x40] sm:$0xff] %vm455_vm1, %v2791_v15  ;;  %464 = vst.msk [vmem:[#allocation2 + $0x48] sm:$0xff] %vm455_vm1, %v2794_v16  ;;  %v2807_v20 = vld [vmem:[%s2742_s30 + $0x58] sm:$0xff]   ;;  %v2120_v21 = vld [vmem:[%s2742_s30 + $0x60] sm:$0xff]   ;;  %s1516_s18 = scalar_lea.sflag [#allocation5], %s2738_s8  ;;  %s2371_s5 = scalar_lea.vmem %s3085_s7, 4096 }
  0xa4   : > { %465 = vst.msk [vmem:[#allocation2 + $0x50] sm:$0xff] %vm455_vm1, %v2800_v18  ;;  %466 = vst.msk [vmem:[#allocation2 + $0x58] sm:$0xff] %vm455_vm1, %v2807_v20  ;;  %v2121_v22 = vld [vmem:[%s2742_s30 + $0x68] sm:$0xff]   ;;  %v2122_v24 = vld [vmem:[%s2742_s30 + $0x70] sm:$0xff]   ;;  %p2372_p2 = scmp.ne.s32.totalorder %s3085_s7, %s2371_s5  ;;  %p3173_p6 = scmp.ne.s32.totalorder %s3161_s28, 0 }
  0xa5   : > { %467 = vst.msk [vmem:[#allocation2 + $0x60] sm:$0xff] %vm455_vm1, %v2120_v21  ;;  %468 = vst.msk [vmem:[#allocation2 + $0x68] sm:$0xff] %vm455_vm1, %v2121_v22  ;;  %v2123_v26 = vld [vmem:[%s2742_s30 + $0x78] sm:$0xff]   ;;  %v2124_v27 = vld [vmem:[%s2750_s26] sm:$0xff]   ;;  %s2473_s11 = smov [#allocation11]  }
  0xa6   : > { %v492_v14 = vld [vmem:[#allocation2 + $0x8] sm:$0xff]  ;;  %v493_v17 = vld [vmem:[#allocation2 + $0x10] sm:$0xff]  ;;  %469 = vst.msk [vmem:[#allocation2 + $0x70] sm:$0xff] %vm455_vm1, %v2122_v24  ;;  %470 = vst.msk [vmem:[#allocation2 + $0x78] sm:$0xff] %vm455_vm1, %v2123_v26  ;;  %p2373_p10 = pnand %p2372_p2, %p3173_p6  ;;  %s2375_s0 = sshll.u32 %s2473_s11, 4  ;;  %s2376_s0 = int_to_ptr.vmem [resolvable:$false] %s2375_s0 }
  0xa7   : > { %1842 = vmatprep.mubr.msk.bf16.mxu1 %vm455_vm1, %v492_v14  ;;  %v494_v19 = vld [vmem:[#allocation2 + $0x18] sm:$0xff]  ;;  %488 = vst.msk [vmem:[#allocation2 + $0x80] sm:$0xff] %vm455_vm1, %v2124_v27  ;;  %v2872_v54 = vld [vmem:[#allocation9] ss:$0 sm:$0xff]  ;;  %s2377_s3 = scalar_lea.vmem %s2376_s0, 8192  ;;  %p2378_p4 = scmp.lt.s32.totalorder %s3085_s7, %s2376_s0 }
  0xa8   : > { %1843 = vmatmul.mubr.msk.bf16.vlgmr.msra.gmra.mrb[0].mxu1 %vm455_vm1, %v493_v17  ;;  %v495_v23 = vld [vmem:[#allocation2 + $0x20] sm:$0xff]  ;;  %v496_v25 = vld [vmem:[#allocation2 + $0x28] sm:$0xff]  ;;  %p2374_p3 = pneg %p2373_p10  ;;  %p2379_p9 = scmp.lt.s32.totalorder %s2377_s3, %s2371_s5 }
  0xa9   : > { %1943 = vmatpush3.bf16.msra.mxu1 %v788_v2  ;;  %1846 = vmatprep.mubr.msk.bf16.mxu1 %vm455_vm1, %v494_v19  ;;  %v2125_v28 = vld [vmem:[%s2750_s26 + $0x8] sm:$0xff]   ;;  %v497_v29 = vld [vmem:[#allocation2 + $0x30] sm:$0xff] }
  0xaa   : > { %1881 = vmatmul.mubr.msk.bf16.gmra.mrb[4].mxu0 %vm455_vm1, %v2111_v9  ;;  %489 = vst.msk [vmem:[#allocation2 + $0x88] sm:$0xff] %vm455_vm1, %v2125_v28  ;;  %v498_v30 = vld [vmem:[#allocation2 + $0x38] sm:$0xff]  ;;  %v499_v31 = vld [vmem:[#allocation2 + $0x40] sm:$0xff]  ;;  %v500_v32 = vld [vmem:[#allocation2 + $0x48] sm:$0xff]  ;;  %p2380_p5 = por %p2379_p9, %p2378_p4 }
  0xab   : > { %1884 = vmatprep.mubr.msk.bf16.mxu0 %vm455_vm1, %v2112_v10  ;;  %v501_v33 = vld [vmem:[#allocation2 + $0x50] sm:$0xff]  ;;  %v502_v34 = vld [vmem:[#allocation2 + $0x58] sm:$0xff] }
  0xac   : > { %v503_v35 = vld [vmem:[#allocation2 + $0x60] sm:$0xff]  ;;  %v504_v36 = vld [vmem:[#allocation2 + $0x68] sm:$0xff]  ;;  %p2381_p7 = pnand %p2380_p5, %p2374_p3 }
  0xad   : > { %v505_v37 = vld [vmem:[#allocation2 + $0x70] sm:$0xff]  ;;  %v506_v38 = vld [vmem:[#allocation2 + $0x78] sm:$0xff] }
  0xae   : > { %v507_v39 = vld [vmem:[#allocation2 + $0x80] sm:$0xff] }
  0xb0   : > { %1847 = vmatmul.mubr.msk.bf16.gmra.mrb[4].mxu1 %vm455_vm1, %v495_v23 }
  0xb1   : > { %1850 = vmatprep.mubr.msk.bf16.mxu1 %vm455_vm1, %v496_v25  ;;  %v967_v40 = vld [vmem:[#allocation2 + $0x88] sm:$0xff] }
  0xb2   : > { %1885 = vmatmul.mubr.msk.bf16.gmra.mrb[8].mxu0 %vm455_vm1, %v2113_v11 }
  0xb3   : > { %1888 = vmatprep.mubr.msk.bf16.mxu0 %vm455_vm1, %v2114_v12 }
  0xb8   : > { %1851 = vmatmul.mubr.msk.bf16.gmra.mrb[8].mxu1 %vm455_vm1, %v497_v29 }
  0xb9   : > { %1854 = vmatprep.mubr.msk.bf16.mxu1 %vm455_vm1, %v498_v30 }
  0xba   : > { %1889 = vmatmul.mubr.msk.bf16.gmra.mrb[12].mxu0 %vm455_vm1, %v2115_v13 }
  0xbb   : > { %1910 = vmatprep.mubr.msk.bf16.mxu0 %vm455_vm1, %v493_v17 }
  0xc0   : > { %1855 = vmatmul.mubr.msk.bf16.gmra.mrb[12].mxu1 %vm455_vm1, %v499_v31 }
  0xc1   : > { %1858 = vmatprep.mubr.msk.bf16.mxu1 %vm455_vm1, %v500_v32 }
  0xc2   : > { %1911 = vmatmul.mubr.msk.bf16.vlgmr.msra.gmra.mrb[0].mxu0 %vm455_vm1, %v494_v19 }
  0xc3   : > { %1914 = vmatprep.mubr.msk.bf16.mxu0 %vm455_vm1, %v495_v23 }
  0xc8   : > { %1859 = vmatmul.mubr.msk.bf16.gmra.mrb[16].mxu1 %vm455_vm1, %v501_v33 }
  0xc9   : > { %1862 = vmatprep.mubr.msk.bf16.mxu1 %vm455_vm1, %v502_v34 }
  0xca   : > { %1915 = vmatmul.mubr.msk.bf16.gmra.mrb[4].mxu0 %vm455_vm1, %v496_v25 }
  0xcb   : > { %1918 = vmatprep.mubr.msk.bf16.mxu0 %vm455_vm1, %v497_v29 }
  0xd0   : > { %1863 = vmatmul.mubr.msk.bf16.gmra.mrb[20].mxu1 %vm455_vm1, %v503_v35 }
  0xd1   : > { %1866 = vmatprep.mubr.msk.bf16.mxu1 %vm455_vm1, %v504_v36 }
  0xd2   : > { %1919 = vmatmul.mubr.msk.bf16.gmra.mrb[8].mxu0 %vm455_vm1, %v498_v30 }
  0xd3   : > { %1922 = vmatprep.mubr.msk.bf16.mxu0 %vm455_vm1, %v499_v31 }
  0xd8   : > { %1867 = vmatmul.mubr.msk.bf16.gmra.mrb[24].mxu1 %vm455_vm1, %v505_v37 }
  0xd9   : > { %1870 = vmatprep.mubr.msk.bf16.mxu1 %vm455_vm1, %v506_v38 }
  0xda   : > { %1923 = vmatmul.mubr.msk.bf16.gmra.mrb[12].mxu0 %vm455_vm1, %v500_v32 }
  0xdb   : > { %1926 = vmatprep.mubr.msk.bf16.mxu0 %vm455_vm1, %v501_v33 }
  0xe0   : > { %1871 = vmatmul.mubr.msk.bf16.gmra.mrb[28].mxu1 %vm455_vm1, %v507_v39 }
  0xe1   : > { %1892 = vmatprep.mubr.msk.bf16.mxu1 %vm455_vm1, %v2791_v15 }
  0xe2   : > { %1927 = vmatmul.mubr.msk.bf16.gmra.mrb[16].mxu0 %vm455_vm1, %v502_v34 }
  0xe3   : > { %1930 = vmatprep.mubr.msk.bf16.mxu0 %vm455_vm1, %v503_v35 }
  0xe8   : > { %1893 = vmatmul.mubr.msk.bf16.vlgmr.msra.gmra.mrb[16].mxu1 %vm455_vm1, %v2794_v16 }
  0xe9   : > { %1896 = vmatprep.mubr.msk.bf16.mxu1 %vm455_vm1, %v2800_v18 }
  0xea   : > { %1931 = vmatmul.mubr.msk.bf16.gmra.mrb[20].mxu0 %vm455_vm1, %v504_v36 }
  0xeb   : > { %1934 = vmatprep.mubr.msk.bf16.mxu0 %vm455_vm1, %v505_v37 }
  0xf0   : > { %1897 = vmatmul.mubr.msk.bf16.gmra.mrb[20].mxu1 %vm455_vm1, %v2807_v20 }
  0xf1   : > { %1900 = vmatprep.mubr.msk.bf16.mxu1 %vm455_vm1, %v2120_v21 }
  0xf2   : > { %1935 = vmatmul.mubr.msk.bf16.gmra.mrb[24].mxu0 %vm455_vm1, %v506_v38 }
  0xf3   : > { %1938 = vmatprep.mubr.msk.bf16.mxu0 %vm455_vm1, %v507_v39 }
  0xf8   : > { %1901 = vmatmul.mubr.msk.bf16.gmra.mrb[24].mxu1 %vm455_vm1, %v2121_v22 }
  0xf9   : > { %1904 = vmatprep.mubr.msk.bf16.mxu1 %vm455_vm1, %v2122_v24 }
  0xfa   : > { %1939 = vmatmul.mubr.msk.bf16.gmra.mrb[28].mxu0 %vm455_vm1, %v967_v40 }
 0x100   : > { %1905 = vmatmul.mubr.msk.bf16.gmra.mrb[28].mxu1 %vm455_vm1, %v2123_v26 }
 0x17b   : > { %v1844_v41 = vpop.f32.mrb[0].mxu1 }
 0x17c   : > { %v602_v42 = vpop.f32.mrb[1].mxu1 }
 0x17d   : > { %v1845_v43 = vpop.f32.mrb[2].mxu1 }
 0x17e   : > { %v605_v44 = vpop.f32.mrb[3].mxu1 }
 0x183   : > { %v1848_v45 = vpop.f32.mrb[4].mxu1 }
 0x184   : > { %v618_v46 = vpop.f32.mrb[5].mxu1 }
 0x185   : > { %v1849_v47 = vpop.f32.mrb[6].mxu1 }
 0x186   : > { %v621_v48 = vpop.f32.mrb[7].mxu1 }
 0x18b   : > { %v1852_v49 = vpop.f32.mrb[8].mxu1 }
 0x18c   : > { %v634_v50 = vpop.f32.mrb[9].mxu1 }
 0x18d   : > { %v1853_v51 = vpop.f32.mrb[10].mxu1 }
 0x18e   : > { %v2870_v52 = vpop.f32.mrb[11].mxu1 }
 0x193   : > { %v2874_v55 = vpop.f32.mrb[12].mxu1 }
 0x194   : > { %v2876_v58 = vpop.f32.mrb[13].mxu1 }
 0x195   : > { %v1912_v53 = vpop.f32.mrb[0].mxu0  ;;  %v2878_v61 = vpop.f32.mrb[14].mxu1 }
 0x196   : > { %v1944_v56 = vadd.f32 %v1912_v53, %v1844_v41  ;;  %v1061_v57 = vpop.f32.mrb[1].mxu0  ;;  %v2883_v1 = vpop.f32.mrb[15].mxu1 }
 0x197   : > { %v1945_v59 = vadd.f32 %v1061_v57, %v602_v42  ;;  %v1913_v60 = vpop.f32.mrb[2].mxu0 }
 0x198   : > { %v2881_v62 = vadd.f32 %v1944_v56, %v2872_v54  ;;  %v1946_v63 = vadd.f32 %v1913_v60, %v1845_v43  ;;  %v1064_v0 = vpop.f32.mrb[3].mxu0 }
 0x199   : > { %v2886_v2 = vadd.f32 %v1945_v59, %v2872_v54  ;;  %v1947_v3 = vadd.f32 %v1064_v0, %v605_v44 }
 0x19a   : > { %v1753_v4 = vmul.f32 -1.442695, %v2881_v62  ;;  %v2890_v5 = vadd.f32 %v1946_v63, %v2872_v54 }
 0x19b   : > { %v1751_v6 = vmul.f32 -1.442695, %v2886_v2  ;;  %v2894_v7 = vadd.f32 %v1947_v3, %v2872_v54 }
 0x19c   : > { %2126 = vpow2.f32 %v1753_v4  ;;  %v1754_v8 = vmul.f32 -1.442695, %v2890_v5 }
 0x19d   : > { %2128 = vpow2.f32 %v1751_v6  ;;  %v1752_v9 = vmul.f32 -1.442695, %v2894_v7  ;;  %v1916_v10 = vpop.f32.mrb[4].mxu0 }
 0x19e   : > { %2130 = vpow2.f32 %v1754_v8  ;;  %v1948_v11 = vadd.f32 %v1916_v10, %v1848_v45  ;;  %v1077_v12 = vpop.f32.mrb[5].mxu0 }
 0x19f   : > { %2132 = vpow2.f32 %v1752_v9  ;;  %v1949_v13 = vadd.f32 %v1077_v12, %v618_v46  ;;  %v1917_v14 = vpop.f32.mrb[6].mxu0 }
 0x1a0   : > { %v2899_v15 = vadd.f32 %v1948_v11, %v2872_v54  ;;  %v1950_v16 = vadd.f32 %v1917_v14, %v1849_v47  ;;  %v1080_v17 = vpop.f32.mrb[7].mxu0 }
 0x1a1   : > { %v2902_v18 = vadd.f32 %v1949_v13, %v2872_v54  ;;  %v1951_v19 = vadd.f32 %v1080_v17, %v621_v48 }
 0x1a2   : > { %v1757_v20 = vmul.f32 -1.442695, %v2899_v15  ;;  %v2906_v21 = vadd.f32 %v1950_v16, %v2872_v54 }
 0x1a3   : > { %v1755_v22 = vmul.f32 -1.442695, %v2902_v18  ;;  %v2910_v23 = vadd.f32 %v1951_v19, %v2872_v54 }
 0x1a4   : > { %2134 = vpow2.f32 %v1757_v20  ;;  %v1758_v24 = vmul.f32 -1.442695, %v2906_v21 }
 0x1a5   : > { %2136 = vpow2.f32 %v1755_v22  ;;  %v1756_v25 = vmul.f32 -1.442695, %v2910_v23  ;;  %v1920_v26 = vpop.f32.mrb[8].mxu0 }
 0x1a6   : > { %v2127_v27 = vpop.eup %2126  ;;  %2138 = vpow2.f32 %v1758_v24  ;;  %v1952_v28 = vadd.f32 %v1920_v26, %v1852_v49  ;;  %v1093_v29 = vpop.f32.mrb[9].mxu0 }
 0x1a7   : > { %v2129_v30 = vpop.eup %2128  ;;  %v1357_v31 = vadd.f32 1.0, %v2127_v27  ;;  %2140 = vpow2.f32 %v1756_v25  ;;  %v1953_v32 = vadd.f32 %v1093_v29, %v634_v50  ;;  %v1921_v33 = vpop.f32.mrb[10].mxu0 }
 0x1a8   : > { %v2131_v34 = vpop.eup %2130  ;;  %v1355_v35 = vadd.f32 1.0, %v2129_v30  ;;  %v2915_v36 = vadd.f32 %v1952_v28, %v2872_v54  ;;  %v1954_v37 = vadd.f32 %v1921_v33, %v1853_v51  ;;  %v1096_v38 = vpop.f32.mrb[11].mxu0 }
 0x1a9   : > { %v2133_v39 = vpop.eup %2132  ;;  %2142 = vrcp.f32 %v1357_v31  ;;  %v1358_v40 = vadd.f32 1.0, %v2131_v34  ;;  %v2918_v41 = vadd.f32 %v1953_v32, %v2872_v54  ;;  %v1955_v42 = vadd.f32 %v1096_v38, %v2870_v52 }
 0x1aa   : > { %2144 = vrcp.f32 %v1355_v35  ;;  %v1356_v43 = vadd.f32 1.0, %v2133_v39  ;;  %v1761_v44 = vmul.f32 -1.442695, %v2915_v36  ;;  %v2923_v45 = vadd.f32 %v1954_v37, %v2872_v54 }
 0x1ab   : > { %2146 = vrcp.f32 %v1358_v40  ;;  %v1759_v46 = vmul.f32 -1.442695, %v2918_v41  ;;  %v2927_v47 = vadd.f32 %v1955_v42, %v2872_v54 }
 0x1ac   : > { %2148 = vrcp.f32 %v1356_v43  ;;  %v1762_v48 = vmul.f32 -1.442695, %v2923_v45 }
 0x1ad   : > { %2150 = vpow2.f32 %v1761_v44  ;;  %v1760_v49 = vmul.f32 -1.442695, %v2927_v47  ;;  %v1924_v50 = vpop.f32.mrb[12].mxu0 }
 0x1ae   : > { %v2135_v51 = vpop.eup %2134  ;;  %2152 = vpow2.f32 %v1759_v46  ;;  %v1956_v52 = vadd.f32 %v1924_v50, %v2874_v55  ;;  %v1109_v53 = vpop.f32.mrb[13].mxu0 }
 0x1af   : > { %v2137_v56 = vpop.eup %2136  ;;  %v1361_v57 = vadd.f32 1.0, %v2135_v51  ;;  %2154 = vpow2.f32 %v1762_v48  ;;  %v1957_v59 = vadd.f32 %v1109_v53, %v2876_v58  ;;  %v1925_v60 = vpop.f32.mrb[14].mxu0 }
 0x1b0   : > { %v2139_v63 = vpop.eup %2138  ;;  %v1359_v0 = vadd.f32 1.0, %v2137_v56  ;;  %2156 = vpow2.f32 %v1760_v49  ;;  %v2935_v3 = vadd.f32 %v1956_v52, %v2872_v54  ;;  %v1958_v4 = vadd.f32 %v1925_v60, %v2878_v61  ;;  %v1112_v6 = vpop.f32.mrb[15].mxu0 }
 0x1b1   : > { %v2141_v8 = vpop.eup %2140  ;;  %2158 = vrcp.f32 %v1361_v57  ;;  %v1362_v55 = vadd.f32 1.0, %v2139_v63  ;;  %v2939_v9 = vadd.f32 %v1957_v59, %v2872_v54  ;;  %v1959_v10 = vadd.f32 %v1112_v6, %v2883_v1 }
 0x1b2   : > { %2160 = vrcp.f32 %v1359_v0  ;;  %v1360_v58 = vadd.f32 1.0, %v2141_v8  ;;  %v1765_v11 = vmul.f32 -1.442695, %v2935_v3  ;;  %v2944_v12 = vadd.f32 %v1958_v4, %v2872_v54 }
 0x1b3   : > { %v2143_v13 = vpop.eup %2142  ;;  %2162 = vrcp.f32 %v1362_v55  ;;  %v1763_v61 = vmul.f32 -1.442695, %v2939_v9  ;;  %v2948_v14 = vadd.f32 %v1959_v10, %v2872_v54 }
 0x1b4   : > { %v2145_v16 = vpop.eup %2144  ;;  %v1453_v17 = vmul.f32 %v2143_v13, %v2881_v62  ;;  %2164 = vrcp.f32 %v1360_v58  ;;  %v1766_v1 = vmul.f32 -1.442695, %v2944_v12 }
 0x1b5   : > { %v2147_v19 = vpop.eup %2146  ;;  %v1451_v20 = vmul.f32 %v2145_v16, %v2886_v2  ;;  %2166 = vpow2.f32 %v1765_v11  ;;  %v1764_v22 = vmul.f32 -1.442695, %v2948_v14  ;;  %v1928_v24 = vpop.f32.mrb[16].mxu0 }
 0x1b6   : > { %v2149_v25 = vpop.eup %2148  ;;  %1485 = vst [vmem:[%s2954_s23 + $0x10] sm:$0xff] %v1453_v17  ;;  %v1454_v62 = vmul.f32 %v2147_v19, %v2890_v5  ;;  %2168 = vpow2.f32 %v1763_v61  ;;  %v1125_v26 = vpop.f32.mrb[17].mxu0 }
 0x1b7   : > { %v2151_v27 = vpop.eup %2150  ;;  %1483 = vst [vmem:[%s2954_s23] sm:$0xff] %v1451_v20  ;;  %v1452_v2 = vmul.f32 %v2149_v25, %v2894_v7  ;;  %2170 = vpow2.f32 %v1766_v1  ;;  %v1929_v28 = vpop.f32.mrb[18].mxu0 }
 0x1b8   : > { %v2153_v29 = vpop.eup %2152  ;;  %1486 = vst [vmem:[%s2954_s23 + $0x18] sm:$0xff] %v1454_v62  ;;  %v1365_v30 = vadd.f32 1.0, %v2151_v27  ;;  %2172 = vpow2.f32 %v1764_v22  ;;  %v1128_v31 = vpop.f32.mrb[19].mxu0 }
 0x1b9   : > { %v2155_v32 = vpop.eup %2154  ;;  %1484 = vst [vmem:[%s2954_s23 + $0x8] sm:$0xff] %v1452_v2  ;;  %v1363_v33 = vadd.f32 1.0, %v2153_v29 }
 0x1ba   : > { %v2157_v34 = vpop.eup %2156  ;;  %2174 = vrcp.f32 %v1365_v30  ;;  %v1366_v5 = vadd.f32 1.0, %v2155_v32 }
 0x1bb   : > { %v2159_v35 = vpop.eup %2158  ;;  %2176 = vrcp.f32 %v1363_v33  ;;  %v1364_v37 = vadd.f32 1.0, %v2157_v34  ;;  %v1894_v46 = vpop.f32.mrb[16].mxu1 }
 0x1bc   : > { %v2161_v38 = vpop.eup %2160  ;;  %v1457_v7 = vmul.f32 %v2159_v35, %v2899_v15  ;;  %2178 = vrcp.f32 %v1366_v5  ;;  %v1960_v51 = vadd.f32 %v1928_v24, %v1894_v46  ;;  %v888_v15 = vpop.f32.mrb[17].mxu1 }
 0x1bd   : > { %v2163_v39 = vpop.eup %2162  ;;  %v1455_v40 = vmul.f32 %v2161_v38, %v2902_v18  ;;  %2180 = vrcp.f32 %v1364_v37  ;;  %v1932_v42 = vpop.f32.mrb[20].mxu0  ;;  %v1961_v18 = vadd.f32 %v1125_v26, %v888_v15 }
 0x1be   : > { %v2165_v43 = vpop.eup %2164  ;;  %1489 = vst [vmem:[%s2954_s23 + $0x30] sm:$0xff] %v1457_v7  ;;  %v1458_v44 = vmul.f32 %v2163_v39, %v2906_v21  ;;  %v1141_v48 = vpop.f32.mrb[21].mxu0  ;;  %v2971_v21 = vadd.f32 %v1960_v51, %v2872_v54 }
 0x1bf   : > { %v2167_v49 = vpop.eup %2166  ;;  %1487 = vst [vmem:[%s2954_s23 + $0x20] sm:$0xff] %v1455_v40  ;;  %v1456_v50 = vmul.f32 %v2165_v43, %v2910_v23  ;;  %v1933_v52 = vpop.f32.mrb[22].mxu0  ;;  %v2974_v8 = vadd.f32 %v1961_v18, %v2872_v54 }
 0x1c0   : > { %v2169_v53 = vpop.eup %2168  ;;  %1490 = vst [vmem:[%s2954_s23 + $0x38] sm:$0xff] %v1458_v44  ;;  %v1369_v56 = vadd.f32 1.0, %v2167_v49  ;;  %v1895_v57 = vpop.f32.mrb[18].mxu1  ;;  %v1769_v58 = vmul.f32 -1.442695, %v2971_v21 }
 0x1c1   : > { %v1144_v59 = vpop.f32.mrb[23].mxu0  ;;  %v2171_v60 = vpop.eup %2170  ;;  %1488 = vst [vmem:[%s2954_s23 + $0x28] sm:$0xff] %v1456_v50  ;;  %v1367_v63 = vadd.f32 1.0, %v2169_v53  ;;  %v1962_v0 = vadd.f32 %v1929_v28, %v1895_v57  ;;  %v1767_v61 = vmul.f32 -1.442695, %v2974_v8 }
 0x1c2   : > { %v891_v4 = vpop.f32.mrb[19].mxu1  ;;  %v2173_v6 = vpop.eup %2172  ;;  %2182 = vrcp.f32 %v1369_v56  ;;  %v1370_v23 = vadd.f32 1.0, %v2171_v60 }
 0x1c3   : > { %v1963_v55 = vadd.f32 %v1128_v31, %v891_v4  ;;  %2184 = vrcp.f32 %v1367_v63  ;;  %v1368_v10 = vadd.f32 1.0, %v2173_v6  ;;  %v2978_v11 = vadd.f32 %v1962_v0, %v2872_v54  ;;  %v1898_v62 = vpop.f32.mrb[20].mxu1 }
 0x1c4   : > { %v2175_v13 = vpop.eup %2174  ;;  %2186 = vrcp.f32 %v1370_v23  ;;  %v904_v28 = vpop.f32.mrb[21].mxu1 }
 0x1c5   : > { %v2982_v16 = vadd.f32 %v1963_v55, %v2872_v54  ;;  %v2177_v17 = vpop.eup %2176  ;;  %v1461_v1 = vmul.f32 %v2175_v13, %v2915_v36  ;;  %2188 = vrcp.f32 %v1368_v10  ;;  %v1770_v19 = vmul.f32 -1.442695, %v2978_v11  ;;  %v1936_v20 = vpop.f32.mrb[24].mxu0 }
 0x1c6   : > { %v2179_v22 = vpop.eup %2178  ;;  %v1459_v24 = vmul.f32 %v2177_v17, %v2918_v41  ;;  %2190 = vpow2.f32 %v1769_v58  ;;  %v1157_v26 = vpop.f32.mrb[25].mxu0  ;;  %v1964_v36 = vadd.f32 %v1932_v42, %v1898_v62  ;;  %v1965_v41 = vadd.f32 %v1141_v48, %v904_v28 }
 0x1c7   : > { %v1768_v25 = vmul.f32 -1.442695, %v2982_v16  ;;  %v2181_v27 = vpop.eup %2180  ;;  %1493 = vst [vmem:[%s2954_s23 + $0x50] sm:$0xff] %v1461_v1  ;;  %v1462_v2 = vmul.f32 %v2179_v22, %v2923_v45  ;;  %2192 = vpow2.f32 %v1767_v61  ;;  %v1937_v29 = vpop.f32.mrb[26].mxu0 }
 0x1c8   : > { %1491 = vst [vmem:[%s2954_s23 + $0x40] sm:$0xff] %v1459_v24  ;;  %v1460_v30 = vmul.f32 %v2181_v27, %v2927_v47  ;;  %2194 = vpow2.f32 %v1770_v19  ;;  %v1899_v31 = vpop.f32.mrb[22].mxu1  ;;  %v1160_v32 = vpop.f32.mrb[27].mxu0  ;;  %v2994_v33 = vadd.f32 %v1964_v36, %v2872_v54  ;;  %v2998_v45 = vadd.f32 %v1965_v41, %v2872_v54 }
 0x1c9   : > { %1494 = vst [vmem:[%s2954_s23 + $0x58] sm:$0xff] %v1462_v2  ;;  %2196 = vpow2.f32 %v1768_v25  ;;  %v1966_v34 = vadd.f32 %v1933_v52, %v1899_v31  ;;  %v907_v5 = vpop.f32.mrb[23].mxu1 }
 0x1ca   : > { %1492 = vst [vmem:[%s2954_s23 + $0x48] sm:$0xff] %v1460_v30  ;;  %v1967_v35 = vadd.f32 %v1144_v59, %v907_v5  ;;  %v1773_v37 = vmul.f32 -1.442695, %v2994_v33  ;;  %v1771_v7 = vmul.f32 -1.442695, %v2998_v45 }
 0x1cb   : > { %v3002_v47 = vadd.f32 %v1966_v34, %v2872_v54  ;;  %v1902_v50 = vpop.f32.mrb[24].mxu1 }
 0x1cc   : > { %v2183_v38 = vpop.eup %2182  ;;  %v3006_v39 = vadd.f32 %v1967_v35, %v2872_v54  ;;  %2198 = vpow2.f32 %v1773_v37  ;;  %v920_v53 = vpop.f32.mrb[25].mxu1 }
 0x1cd   : > { %v2185_v40 = vpop.eup %2184  ;;  %v1465_v42 = vmul.f32 %v2183_v38, %v2935_v3  ;;  %v1774_v43 = vmul.f32 -1.442695, %v3002_v47  ;;  %v1940_v44 = vpop.f32.mrb[28].mxu0  ;;  %2200 = vpow2.f32 %v1771_v7  ;;  %v1968_v3 = vadd.f32 %v1936_v20, %v1902_v50 }
 0x1ce   : > { %v2187_v46 = vpop.eup %2186  ;;  %v1463_v48 = vmul.f32 %v2185_v40, %v2939_v9  ;;  %v1772_v49 = vmul.f32 -1.442695, %v3006_v39  ;;  %v1173_v51 = vpop.f32.mrb[29].mxu0  ;;  %v1969_v9 = vadd.f32 %v1157_v26, %v920_v53 }
 0x1cf   : > { %v2189_v15 = vpop.eup %2188  ;;  %1497 = vst [vmem:[%s2954_s23 + $0x70] sm:$0xff] %v1465_v42  ;;  %v1466_v52 = vmul.f32 %v2187_v46, %v2944_v12  ;;  %2202 = vpow2.f32 %v1774_v43  ;;  %v1941_v56 = vpop.f32.mrb[30].mxu0  ;;  %v3018_v4 = vadd.f32 %v1968_v3, %v2872_v54 }
 0x1d0   : > { %v2191_v18 = vpop.eup %2190  ;;  %1495 = vst [vmem:[%s2954_s23 + $0x60] sm:$0xff] %v1463_v48  ;;  %v1464_v57 = vmul.f32 %v2189_v15, %v2948_v14  ;;  %2204 = vpow2.f32 %v1772_v49  ;;  %v1903_v59 = vpop.f32.mrb[26].mxu1  ;;  %v3022_v10 = vadd.f32 %v1969_v9, %v2872_v54 }
 0x1d1   : > { %v1176_v60 = vpop.f32.mrb[31].mxu0  ;;  %v2193_v63 = vpop.eup %2192  ;;  %1498 = vst [vmem:[%s2954_s23 + $0x78] sm:$0xff] %v1466_v52  ;;  %v1373_v0 = vadd.f32 1.0, %v2191_v18  ;;  %v1970_v12 = vadd.f32 %v1937_v29, %v1903_v59  ;;  %v1777_v61 = vmul.f32 -1.442695, %v3018_v4 }
 0x1d2   : > { %v923_v6 = vpop.f32.mrb[27].mxu1  ;;  %v2195_v23 = vpop.eup %2194  ;;  %1496 = vst [vmem:[%s2954_s23 + $0x68] sm:$0xff] %v1464_v57  ;;  %v1371_v55 = vadd.f32 1.0, %v2193_v63  ;;  %v1775_v19 = vmul.f32 -1.442695, %v3022_v10 }
 0x1d3   : > { %v1971_v58 = vadd.f32 %v1160_v32, %v923_v6  ;;  %v2197_v14 = vpop.eup %2196  ;;  %2206 = vrcp.f32 %v1373_v0  ;;  %v1374_v13 = vadd.f32 1.0, %v2195_v23  ;;  %v3026_v17 = vadd.f32 %v1970_v12, %v2872_v54  ;;  %v1906_v24 = vpop.f32.mrb[28].mxu1 }
 0x1d4   : > { %2208 = vrcp.f32 %v1371_v55  ;;  %v1372_v1 = vadd.f32 1.0, %v2197_v14  ;;  %v1972_v62 = vadd.f32 %v1940_v44, %v1906_v24  ;;  %v936_v26 = vpop.f32.mrb[29].mxu1 }
 0x1d5   : > { %v3030_v20 = vadd.f32 %v1971_v58, %v2872_v54  ;;  %2210 = vrcp.f32 %v1374_v13  ;;  %v1778_v22 = vmul.f32 -1.442695, %v3026_v17  ;;  %v1973_v28 = vadd.f32 %v1173_v51, %v936_v26  ;;  %v1907_v29 = vpop.f32.mrb[30].mxu1 }
 0x1d6   : > { %2212 = vrcp.f32 %v1372_v1  ;;  %v2199_v25 = vpop.eup %2198  ;;  %v3035_v31 = vadd.f32 %v1972_v62, %v2872_v54  ;;  %v1974_v32 = vadd.f32 %v1941_v56, %v1907_v29  ;;  %v939_v34 = vpop.f32.mrb[31].mxu1 }
 0x1d7   : > { %2214 = vpow2.f32 %v1777_v61  ;;  %v2201_v27 = vpop.eup %2200  ;;  %v1377_v2 = vadd.f32 1.0, %v2199_v25  ;;  %v1776_v36 = vmul.f32 -1.442695, %v3030_v20  ;;  %v3038_v37 = vadd.f32 %v1973_v28, %v2872_v54 }
 0x1d8   : > { %2216 = vpow2.f32 %v1775_v19  ;;  %v1375_v41 = vadd.f32 1.0, %v2201_v27  ;;  %v1975_v38 = vadd.f32 %v1176_v60, %v939_v34  ;;  %v1781_v40 = vmul.f32 -1.442695, %v3035_v31 }
 0x1d9   : > { %v2203_v30 = vpop.eup %2202  ;;  %2218 = vpow2.f32 %v1778_v22  ;;  %v3042_v42 = vadd.f32 %v1974_v32, %v2872_v54  ;;  %v1779_v43 = vmul.f32 -1.442695, %v3038_v37 }
 0x1da   : > { %v2205_v5 = vpop.eup %2204  ;;  %2220 = vrcp.f32 %v1377_v2  ;;  %v1378_v35 = vadd.f32 1.0, %v2203_v30  ;;  %v3046_v44 = vadd.f32 %v1975_v38, %v2872_v54 }
 0x1db   : > { %2222 = vrcp.f32 %v1375_v41  ;;  %v1376_v7 = vadd.f32 1.0, %v2205_v5  ;;  %v1782_v48 = vmul.f32 -1.442695, %v3042_v42 }
 0x1dc   : > { %2224 = vrcp.f32 %v1378_v35  ;;  %v1780_v51 = vmul.f32 -1.442695, %v3046_v44 }
 0x1dd   : > { %v2207_v46 = vpop.eup %2206  ;;  %2226 = vrcp.f32 %v1376_v7 }
 0x1de   : > { %v2209_v49 = vpop.eup %2208  ;;  %v1469_v50 = vmul.f32 %v2207_v46, %v2971_v21  ;;  %2228 = vpow2.f32 %v1776_v36 }
 0x1df   : > { %v2211_v15 = vpop.eup %2210  ;;  %v1467_v52 = vmul.f32 %v2209_v49, %v2974_v8  ;;  %2230 = vpow2.f32 %v1781_v40 }
 0x1e0   : > { %v2213_v3 = vpop.eup %2212  ;;  %1501 = vst [vmem:[%s2954_s23 + $0x90] sm:$0xff] %v1469_v50  ;;  %v1470_v54 = vmul.f32 %v2211_v15, %v2978_v11  ;;  %2232 = vpow2.f32 %v1779_v43 }
 0x1e1   : > { %v2215_v53 = vpop.eup %2214  ;;  %1499 = vst [vmem:[%s2954_s23 + $0x80] sm:$0xff] %v1467_v52  ;;  %v1468_v56 = vmul.f32 %v2213_v3, %v2982_v16  ;;  %2234 = vpow2.f32 %v1782_v48 }
 0x1e2   : > { %v2217_v18 = vpop.eup %2216  ;;  %1502 = vst [vmem:[%s2954_s23 + $0x98] sm:$0xff] %v1470_v54  ;;  %v1381_v21 = vadd.f32 1.0, %v2215_v53  ;;  %2236 = vpow2.f32 %v1780_v51 }
 0x1e3   : > { %v2219_v57 = vpop.eup %2218  ;;  %1500 = vst [vmem:[%s2954_s23 + $0x88] sm:$0xff] %v1468_v56  ;;  %v1379_v8 = vadd.f32 1.0, %v2217_v18 }
 0x1e4   : > { %v2221_v9 = vpop.eup %2220  ;;  %2238 = vrcp.f32 %v1381_v21  ;;  %v1382_v59 = vadd.f32 1.0, %v2219_v57 }
 0x1e5   : > { %v2223_v11 = vpop.eup %2222  ;;  %v1473_v60 = vmul.f32 %v2221_v9, %v2994_v33  ;;  %2240 = vrcp.f32 %v1379_v8 }
 0x1e6   : > { %v2225_v16 = vpop.eup %2224  ;;  %v1471_v63 = vmul.f32 %v2223_v11, %v2998_v45  ;;  %2242 = vrcp.f32 %v1382_v59 }
 0x1e7   : > { %v2227_v0 = vpop.eup %2226  ;;  %1505 = vst [vmem:[%s2954_s23 + $0xb0] sm:$0xff] %v1473_v60  ;;  %v1474_v12 = vmul.f32 %v2225_v16, %v3002_v47 }
 0x1e8   : > { %v2229_v6 = vpop.eup %2228  ;;  %1503 = vst [vmem:[%s2954_s23 + $0xa0] sm:$0xff] %v1471_v63  ;;  %v1472_v23 = vmul.f32 %v2227_v0, %v3006_v39 }
 0x1e9   : > { %v2231_v55 = vpop.eup %2230  ;;  %1506 = vst [vmem:[%s2954_s23 + $0xb8] sm:$0xff] %v1474_v12  ;;  %v1380_v58 = vadd.f32 1.0, %v2229_v6 }
 0x1ea   : > { %v2233_v14 = vpop.eup %2232  ;;  %1504 = vst [vmem:[%s2954_s23 + $0xa8] sm:$0xff] %v1472_v23  ;;  %v1385_v13 = vadd.f32 1.0, %v2231_v55 }
 0x1eb   : > { %v2235_v33 = vpop.eup %2234  ;;  %2244 = vrcp.f32 %v1380_v58  ;;  %v1383_v45 = vadd.f32 1.0, %v2233_v14 }
 0x1ec   : > { %v2237_v61 = vpop.eup %2236  ;;  %2246 = vrcp.f32 %v1385_v13  ;;  %v1386_v1 = vadd.f32 1.0, %v2235_v33 }
 0x1ed   : > { %2248 = vrcp.f32 %v1383_v45  ;;  %v1384_v47 = vadd.f32 1.0, %v2237_v61 }
 0x1ee   : > { %v2239_v39 = vpop.eup %2238  ;;  %2250 = vrcp.f32 %v1386_v1 }
 0x1ef   : > { %v2241_v19 = vpop.eup %2240  ;;  %v1477_v22 = vmul.f32 %v2239_v39, %v3018_v4  ;;  %2252 = vrcp.f32 %v1384_v47 }
 0x1f0   : > { %v2243_v24 = vpop.eup %2242  ;;  %v1475_v25 = vmul.f32 %v2241_v19, %v3022_v10 }
 0x1f1   : > { %1509 = vst [vmem:[%s2954_s23 + $0xd0] sm:$0xff] %v1477_v22  ;;  %v1478_v62 = vmul.f32 %v2243_v24, %v3026_v17 }
 0x1f2   : > { %1507 = vst [vmem:[%s2954_s23 + $0xc0] sm:$0xff] %v1475_v25 }
 0x1f3   : > { %1510 = vst [vmem:[%s2954_s23 + $0xd8] sm:$0xff] %v1478_v62 }
 0x1f5   : > { %v2245_v26 = vpop.eup %2244 }
 0x1f6   : > { %v2247_v27 = vpop.eup %2246  ;;  %v1476_v2 = vmul.f32 %v2245_v26, %v3030_v20 }
 0x1f7   : > { %v2249_v4 = vpop.eup %2248  ;;  %v1481_v36 = vmul.f32 %v2247_v27, %v3035_v31 }
 0x1f8   : > { %v2251_v10 = vpop.eup %2250  ;;  %1508 = vst [vmem:[%s2954_s23 + $0xc8] sm:$0xff] %v1476_v2  ;;  %v1479_v17 = vmul.f32 %v2249_v4, %v3038_v37 }
 0x1f9   : > { %v2253_v28 = vpop.eup %2252  ;;  %1513 = vst [vmem:[%s2954_s23 + $0xf0] sm:$0xff] %v1481_v36  ;;  %v1482_v29 = vmul.f32 %v2251_v10, %v3042_v42 }
 0x1fa   : > { %1511 = vst [vmem:[%s2954_s23 + $0xe0] sm:$0xff] %v1479_v17  ;;  %v1480_v20 = vmul.f32 %v2253_v28, %v3046_v44 }
 0x1fb   : > { %1514 = vst [vmem:[%s2954_s23 + $0xf8] sm:$0xff] %v1482_v29 }
 0x1fc   : > { %1512 = vst [vmem:[%s2954_s23 + $0xe8] sm:$0xff] %v1480_v20 }
 0x1fd   : > { %2384 = shalt.err (!%p2381_p7)
}
 0x1fe   : > { %s2385_s9 = scalar_lea.hbm %s3083_s12, 4096  ;;  %s2389_s10 = scalar_lea.hbm %s3142_s4, 8192 }
 0x1ff   : > { %p2386_p11 = scmp.ne.s32.totalorder %s3083_s12, %s2385_s9  ;;  %p2390_p12 = scmp.lt.u32.totalorder %s3083_s12, %s3142_s4 }
 0x200   : > { %p2391_p13 = scmp.lt.u32.totalorder %s2389_s10, %s2385_s9  ;;  %p2393_p2 = scmp.lt.u32.totalorder %s2385_s9, %s3083_s12 }
 0x201   : > { %p2387_p1 = pnand %p2386_p11, %p3173_p6 }
 0x202   : > { %p2392_p0 = por %p2391_p13, %p2390_p12 }
 0x203   : > { %p2388_p8 = pneg %p2387_p1 }
 0x204   : > { %p2394_p10 = por %p2393_p2, %p2392_p0 }
 0x206   : > { %p2395_p3 = pnand %p2394_p10, %p2388_p8 }
 0x208   : > { %2398 = shalt.err (!%p2395_p3)
}
 0x209   : > { %s2474_s25 = smov 128   ;;  %s2475_s14 = smov 8  }
 0x20a   : > { %2025 = dma.vmem_to_hbm [thread:$0]  (%p3173_p6), %s3085_s7, 4096, %s3083_s12, %s1516_s18, %s2474_s25, %s2474_s25, %s2475_s14  }
 0x20b PF: > { %s1547_s26 = sand.u32 1, %s2445_s15   ;;  %p3174_p4 = scmp.ne.s32.totalorder %s3154_s24, 0 }
 0x20c   : > { %p3175_p9 = scmp.ge.s32.totalorder %s2465_s20, 2  ;;  %s1548_s21 = scalar_lea.sflag [#allocation5], %s1547_s26 }
 0x20e   : > { %p2042_p5 = pnand %p3175_p9, %p3174_p4 }
 0x210   : > { %2440 = dma.done.wait (!%p2042_p5), %s1548_s21, 4096  }
 0x211   : > { %2442 = vsyncadd (!%p2042_p5), %s1548_s21, 4294963200  ;;  %s24_s20 = sadd.s32 1, %s2465_s20   ;;  %s3176_s23 = sld [smem:[#allocation18_spill]] }
 0x212   : > { %p21_p7 = scmp.ge.s32.totalorder %s24_s20, 4   ;;  %s3177_s28 = sld [smem:[#allocation17_spill]] }
 0x213   : > { %s3178_s15 = smov %s2449_s16  ;;  %s3179_s16 = smov %s2453_s17 }
 0x214   : > { %s3181_s18 = smov %s2461_s19  ;;  %23 = sbr.rel (!%p21_p7) target bundleno = 13 (0xd), region = 107 }
 0x217   : > { %s3180_s17 = smov %s3176_s23 }
 0x218   : > { %s3182_s19 = smov %s3177_s28 }
 0x21b   :  { %1553 = vsyncpa [#allocation4], 1 }
 0x21c   :  { %1555 = vsyncpa [#allocation4 + $0x1], 1 }
 0x21d   :  { %1556 = vsyncpa [#allocation7], 1 }
 0x21e   :  { %1558 = vsyncpa [#allocation7 + $0x1], 1 }
 0x21f   :  { %1559 = vsyncpa [#allocation10], 1 }
 0x220   :  { %1560 = vsyncpa [#allocation5], 1 }
 0x221   :  { %1562 = vsyncpa [#allocation5 + $0x1], 1 }

</bundles_post_ra>
